<compile_context>
chip_gen: v7x
topology: tpu7x:2x2x1
jax: 0.10.0
libtpu: 0.0.40
codegen_flags: <defaults>
</compile_context>

<pallas_src>
import functools

import jax
import jax.numpy as jnp
from jax import lax
from jax.experimental import pallas as pl
from jax.experimental.pallas import tpu as pltpu


def _round_up(x: int, m: int) -> int:
    return ((x + m - 1) // m) * m


def _rbm_cd_kernel(w_ref, bh_ref, bv_ref, v_ref, uh_ref, uv_ref, out_ref, *, cdk):
    """One grid step = full CD-k Gibbs chain on one batch tile.

    w_ref   : VMEM (n_p, n_p)      bf16  -- padded W (n_hidden == n_visible)
    bh_ref  : VMEM (n_p, 1)        f32   -- hidden-unit bias
    bv_ref  : VMEM (n_p, 1)        f32   -- visible-unit bias
    v_ref   : VMEM (n_p, TB)       bf16  -- binary visible data tile
    uh_ref  : VMEM (cdk, n_p, TB)  f32   -- uniforms for hidden Bernoulli draws
    uv_ref  : VMEM (cdk, n_p, TB)  f32   -- uniforms for visible Bernoulli draws
    out_ref : VMEM (n_p, TB)       f32   -- binary visible sample tile
    """
    w = w_ref[...]            # bf16, fed straight to the MXU
    wT = w.T                  # hoisted: one transpose per grid step, not per Gibbs step
    nh = w.shape[0]
    nv, tb = v_ref.shape

    # Hoist bias broadcasts out of the CD-k chain (JAX does not CSE broadcast_in_dim).
    bh_b = jnp.broadcast_to(bh_ref[...], (nh, tb))
    bv_b = jnp.broadcast_to(bv_ref[...], (nv, tb))

    def sample_h_given_v(v, u):
        # h_mean = sigmoid(W @ v + b_h[:, None])   (beta = 1.0, see header note)
        h_mean = jax.nn.sigmoid(
            jnp.dot(w, v, preferred_element_type=jnp.float32) + bh_b
        )
        return (u < h_mean).astype(jnp.bfloat16)  # torch.bernoulli(h_mean)

    def sample_v_given_h(h, u, dtype=jnp.bfloat16):
        # v_mean = sigmoid(W.T @ h + b_v[:, None])
        v_mean = jax.nn.sigmoid(
            jnp.dot(wT, h, preferred_element_type=jnp.float32) + bv_b
        )
        return (u < v_mean).astype(dtype)         # torch.bernoulli(v_mean)

    h = sample_h_given_v(v_ref[...], uh_ref[0])

    if cdk <= 4:
        # Short chains: static unroll (LLO scheduler sees the whole chain).
        for i in range(1, cdk):
            v = sample_v_given_h(h, uv_ref[i - 1])
            h = sample_h_given_v(v, uh_ref[i])
    else:
        # Long chains: fori_loop keeps code size and vreg live ranges bounded.
        def body(i, h_carry):
            v = sample_v_given_h(h_carry, uv_ref[i - 1])
            return sample_h_given_v(v, uh_ref[i])

        h = lax.fori_loop(1, cdk, body, h)

    out_ref[...] = sample_v_given_h(h, uv_ref[cdk - 1], out_ref.dtype)


def rbm_forward(v_data, W, b_h, b_v, key, cdk: int = 1, block_batch: int = 512):
    """JAX wrapper: RBM.forward(v_data, CDk=cdk).

    v_data : (n_visible, batch) binary, columns are samples (torch.matmul(W, v) layout)
    W      : (n_hidden, n_visible)
    b_h    : (n_hidden,)  hidden bias   (reference stores it under the swapped name)
    b_v    : (n_visible,) visible bias
    key    : jax PRNG key for the Bernoulli draws
    """
    n_hidden, n_visible = W.shape
    # Reference bias broadcasting requires square W (b_h/b_v size swap in __init__).
    assert n_hidden == n_visible, "reference RBM requires n_hidden == n_visible"
    assert v_data.shape[0] == n_visible
    batch = v_data.shape[1]

    # Pad feature dims to a multiple of 128 (full MXU / lane width); zero padding
    # is numerically inert for the products and is sliced off the output.
    n_p = _round_up(n_visible, 128)
    tb = min(block_batch, _round_up(batch, 128))  # lane-dense batch tile
    batch_p = _round_up(batch, tb)

    W_p = jnp.zeros((n_p, n_p), jnp.bfloat16).at[:n_hidden, :n_visible].set(
        W.astype(jnp.bfloat16))
    bh_p = jnp.zeros((n_p, 1), jnp.float32).at[:n_hidden, 0].set(
        b_h.astype(jnp.float32))
    bv_p = jnp.zeros((n_p, 1), jnp.float32).at[:n_visible, 0].set(
        b_v.astype(jnp.float32))
    v_p = jnp.zeros((n_p, batch_p), jnp.bfloat16).at[:n_visible, :batch].set(
        v_data.astype(jnp.bfloat16))

    # Deterministic uniforms for every Bernoulli draw of the CD-k chain.
    k_h, k_v = jax.random.split(key)
    u_h = jax.random.uniform(k_h, (cdk, n_p, batch_p), dtype=jnp.float32)
    u_v = jax.random.uniform(k_v, (cdk, n_p, batch_p), dtype=jnp.float32)

    grid = (batch_p // tb,)
    kernel = functools.partial(_rbm_cd_kernel, cdk=cdk)

    out_p = pl.pallas_call(
        kernel,
        out_shape=jax.ShapeDtypeStruct((n_p, batch_p), jnp.float32),
        grid=grid,
        in_specs=[
            pl.BlockSpec((n_p, n_p), lambda b: (0, 0)),        # W (resident)
            pl.BlockSpec((n_p, 1), lambda b: (0, 0)),          # b_h
            pl.BlockSpec((n_p, 1), lambda b: (0, 0)),          # b_v
            pl.BlockSpec((n_p, tb), lambda b: (0, b)),         # v_data tile
            pl.BlockSpec((cdk, n_p, tb), lambda b: (0, 0, b)),  # hidden uniforms
            pl.BlockSpec((cdk, n_p, tb), lambda b: (0, 0, b)),  # visible uniforms
        ],
        out_specs=pl.BlockSpec((n_p, tb), lambda b: (0, b)),
        compiler_params=pltpu.CompilerParams(
            dimension_semantics=("parallel",)),                # megacore over batch tiles
    )(W_p, bh_p, bv_p, v_p, u_h, u_v)

    return out_p[:n_visible, :batch]


if __name__ == "__main__":
    # Small, deterministic setup consistent with RBM.__init__ (n_hidden == n_visible
    # is required by the reference's bias broadcasting — see header note).
    n_hidden = 64
    n_visible = 64
    batch = 256

    key = jax.random.PRNGKey(0)
    k_w, k_v, k_samp = jax.random.split(key, 3)

    # __init__: W = 0.01 * randn(n_hidden, n_visible); biases = zeros.
    W = (0.01 * jax.random.normal(k_w, (n_hidden, n_visible))).astype(jnp.float32)
    b_h = jnp.zeros((n_visible,), dtype=jnp.float32)  # shape per reference __init__
    b_v = jnp.zeros((n_hidden,), dtype=jnp.float32)   # shape per reference __init__

    # Binary visible data, layout (n_visible, batch).
    v_data = jax.random.bernoulli(k_v, 0.5, (n_visible, batch)).astype(jnp.float32)

    # block_batch=128 -> 2 batch tiles: exercises the pipelined grid.
    v_model = rbm_forward(v_data, W, b_h, b_v, key=k_samp, cdk=1, block_batch=128)
    v_model = jax.block_until_ready(v_model)

    assert v_model.shape == (n_visible, batch)
    assert v_model.dtype == jnp.float32
    # Output of a Bernoulli sample must be binary.
    assert bool(jnp.all((v_model == 0.0) | (v_model == 1.0)))

    print("KERNEL_OK")
</pallas_src>

<mosaic_0001>
module attributes {stable_mosaic.version = 11 : i64} {
  func.func @_rbm_cd_kernel(%arg0: i32, %arg1: memref<128x128xbf16, #tpu.memory_space<vmem>>, %arg2: memref<128x1xf32, #tpu.memory_space<vmem>>, %arg3: memref<128x1xf32, #tpu.memory_space<vmem>>, %arg4: memref<128x128xbf16, #tpu.memory_space<vmem>>, %arg5: memref<1x128x128xf32, #tpu.memory_space<vmem>>, %arg6: memref<1x128x128xf32, #tpu.memory_space<vmem>>, %arg7: memref<128x128xf32, #tpu.memory_space<vmem>>) attributes {dimension_semantics = [#tpu.dimension_semantics<parallel>], iteration_bounds = array<i64: 2>, scalar_prefetch = 0 : i64, scratch_operands = 0 : i64, tpu.core_type = #tpu.core_type<tc>, window_params = [{pipeline_mode = #tpu.pipeline_mode<synchronous>, transform_indices = @transform_0, window_bounds = array<i64: 128, 128>}, {pipeline_mode = #tpu.pipeline_mode<synchronous>, transform_indices = @transform_1, window_bounds = array<i64: 128, 1>}, {pipeline_mode = #tpu.pipeline_mode<synchronous>, transform_indices = @transform_2, window_bounds = array<i64: 128, 1>}, {transform_indices = @transform_3, window_bounds = array<i64: 128, 128>}, {transform_indices = @transform_4, window_bounds = array<i64: 1, 128, 128>}, {transform_indices = @transform_5, window_bounds = array<i64: 1, 128, 128>}, {transform_indices = @transform_6, window_bounds = array<i64: 128, 128>}]} {
    %c0 = arith.constant 0 : index
    %c0_0 = arith.constant 0 : index
    %0 = vector.load %arg1[%c0, %c0_0] : memref<128x128xbf16, #tpu.memory_space<vmem>>, vector<128x128xbf16>
    %1 = tpu.transpose %0, [1, 0] : vector<128x128xbf16> -> vector<128x128xbf16>
    %c0_1 = arith.constant 0 : index
    %c0_2 = arith.constant 0 : index
    %2 = vector.load %arg2[%c0_1, %c0_2] : memref<128x1xf32, #tpu.memory_space<vmem>>, vector<128x1xf32>
    %3 = vector.shape_cast %2 : vector<128x1xf32> to vector<128x1xf32>
    %4 = vector.broadcast %3 : vector<128x1xf32> to vector<128x128xf32>
    %c0_3 = arith.constant 0 : index
    %c0_4 = arith.constant 0 : index
    %5 = vector.load %arg3[%c0_3, %c0_4] : memref<128x1xf32, #tpu.memory_space<vmem>>, vector<128x1xf32>
    %6 = vector.shape_cast %5 : vector<128x1xf32> to vector<128x1xf32>
    %7 = vector.broadcast %6 : vector<128x1xf32> to vector<128x128xf32>
    %c0_5 = arith.constant 0 : index
    %c0_6 = arith.constant 0 : index
    %8 = vector.load %arg4[%c0_5, %c0_6] : memref<128x128xbf16, #tpu.memory_space<vmem>>, vector<128x128xbf16>
    %c0_7 = arith.constant 0 : index
    %c0_8 = arith.constant 0 : index
    %c0_9 = arith.constant 0 : index
    %9 = vector.load %arg5[%c0_7, %c0_8, %c0_9] : memref<1x128x128xf32, #tpu.memory_space<vmem>>, vector<1x128x128xf32>
    %10 = vector.shape_cast %9 : vector<1x128x128xf32> to vector<128x128xf32>
    %cst = arith.constant dense<0.000000e+00> : vector<128x128xf32>
    %11 = tpu.matmul %0, %8, %cst {dimension_numbers = #tpu.dot_dimension_numbers<[1], [0], [0], [1], [0, 0, 1, 1], [], []>} : vector<128x128xbf16>, vector<128x128xbf16>, vector<128x128xf32> -> vector<128x128xf32>
    %12 = arith.addf %11, %4 : vector<128x128xf32>
    %13 = arith.negf %12 : vector<128x128xf32>
    %14 = math.exp %13 : vector<128x128xf32>
    %cst_10 = arith.constant 1.000000e+00 : f32
    %15 = vector.broadcast %cst_10 : f32 to vector<128x128xf32>
    %16 = arith.addf %15, %14 : vector<128x128xf32>
    %17 = arith.divf %15, %16 : vector<128x128xf32>
    %18 = arith.cmpf olt, %10, %17 : vector<128x128xf32>
    %19 = arith.extui %18 : vector<128x128xi1> to vector<128x128xi32>
    %20 = arith.sitofp %19 : vector<128x128xi32> to vector<128x128xf32>
    %21 = arith.truncf %20 : vector<128x128xf32> to vector<128x128xbf16>
    %c0_11 = arith.constant 0 : index
    %c0_12 = arith.constant 0 : index
    %c0_13 = arith.constant 0 : index
    %22 = vector.load %arg6[%c0_11, %c0_12, %c0_13] : memref<1x128x128xf32, #tpu.memory_space<vmem>>, vector<1x128x128xf32>
    %23 = vector.shape_cast %22 : vector<1x128x128xf32> to vector<128x128xf32>
    %cst_14 = arith.constant dense<0.000000e+00> : vector<128x128xf32>
    %24 = tpu.matmul %1, %21, %cst_14 {dimension_numbers = #tpu.dot_dimension_numbers<[1], [0], [0], [1], [0, 0, 1, 1], [], []>} : vector<128x128xbf16>, vector<128x128xbf16>, vector<128x128xf32> -> vector<128x128xf32>
    %25 = arith.addf %24, %7 : vector<128x128xf32>
    %26 = arith.negf %25 : vector<128x128xf32>
    %27 = math.exp %26 : vector<128x128xf32>
    %cst_15 = arith.constant 1.000000e+00 : f32
    %28 = vector.broadcast %cst_15 : f32 to vector<128x128xf32>
    %29 = arith.addf %28, %27 : vector<128x128xf32>
    %30 = arith.divf %28, %29 : vector<128x128xf32>
    %31 = arith.cmpf olt, %23, %30 : vector<128x128xf32>
    %32 = arith.extui %31 : vector<128x128xi1> to vector<128x128xi32>
    %33 = arith.sitofp %32 : vector<128x128xi32> to vector<128x128xf32>
    %c0_16 = arith.constant 0 : index
    %c0_17 = arith.constant 0 : index
    %34 = vector.load %arg7[%c0_16, %c0_17] : memref<128x128xf32, #tpu.memory_space<vmem>>, vector<128x128xf32>
    tpu.vector_store %arg7[%c0_16, %c0_17], %33 {strides = array<i32>} : memref<128x128xf32, #tpu.memory_space<vmem>>, vector<128x128xf32>,
    return
  }
  func.func @transform_0(%arg0: i32) -> (i32, i32) {
    %c0_i32 = arith.constant 0 : i32
    %c0_i32_0 = arith.constant 0 : i32
    %c0_i32_1 = arith.constant 0 : i32
    return %c0_i32, %c0_i32_0 : i32, i32
  }
  func.func @transform_1(%arg0: i32) -> (i32, i32) {
    %c0_i32 = arith.constant 0 : i32
    %c0_i32_0 = arith.constant 0 : i32
    %c0_i32_1 = arith.constant 0 : i32
    return %c0_i32, %c0_i32_0 : i32, i32
  }
  func.func @transform_2(%arg0: i32) -> (i32, i32) {
    %c0_i32 = arith.constant 0 : i32
    %c0_i32_0 = arith.constant 0 : i32
    %c0_i32_1 = arith.constant 0 : i32
    return %c0_i32, %c0_i32_0 : i32, i32
  }
  func.func @transform_3(%arg0: i32) -> (i32, i32) {
    %c0_i32 = arith.constant 0 : i32
    %c0_i32_0 = arith.constant 0 : i32
    return %c0_i32, %arg0 : i32, i32
  }
  func.func @transform_4(%arg0: i32) -> (i32, i32, i32) {
    %c0_i32 = arith.constant 0 : i32
    %c0_i32_0 = arith.constant 0 : i32
    %c0_i32_1 = arith.constant 0 : i32
    return %c0_i32, %c0_i32_0, %arg0 : i32, i32, i32
  }
  func.func @transform_5(%arg0: i32) -> (i32, i32, i32) {
    %c0_i32 = arith.constant 0 : i32
    %c0_i32_0 = arith.constant 0 : i32
    %c0_i32_1 = arith.constant 0 : i32
    return %c0_i32, %c0_i32_0, %arg0 : i32, i32, i32
  }
  func.func @transform_6(%arg0: i32) -> (i32, i32) {
    %c0_i32 = arith.constant 0 : i32
    %c0_i32_0 = arith.constant 0 : i32
    return %c0_i32, %arg0 : i32, i32
  }
}

</mosaic_0001>

<bundles_post_ra>
// kernel: tpu_custom_call.1
= control target key start
LH: loop header
LB: loop body
LE: loop exit
PB: predicated region body
PF: predicated region fallthrough
CT: control target
= control target key end

     0   :  { %s2554_s0 = inlined_call_operand.hbm [shape: bf16[128,128], index: 0, kind: input, shape index: {}]   ;;  %s2555_s1 = inlined_call_operand.vmem [shape: f32[128,1], index: 1, kind: input, shape index: {}]   ;;  %s2556_s2 = inlined_call_operand.vmem [shape: f32[128,1], index: 2, kind: input, shape index: {}]   ;;  %s2557_s3 = inlined_call_operand.hbm [shape: bf16[128,256], index: 3, kind: input, shape index: {}]   ;;  %s2558_s4 = inlined_call_operand.vmem [shape: f32[1,128,256], index: 4, kind: input, shape index: {}]   ;;  %s2559_s5 = inlined_call_operand.hbm [shape: f32[1,128,256], index: 5, kind: input, shape index: {}]   ;;  %s2560_s6 = inlined_call_operand.hbm [shape: f32[128,256], index: 6, kind: output, shape index: {}]  }
   0x1   :  { %2567 = sst [smem:[#allocation13_spill]] %s2554_s0 }
   0x2   :  { %11 = vsyncpa [#allocation3], 0 }
   0x3   :  { %12 = vsyncpa [#allocation6], 0 }
   0x4   :  { %14 = vsyncpa [#allocation6 + $0x1], 0 }
   0x5   :  { %15 = vsyncpa [#allocation4], 0 }
   0x6   :  { %17 = vsyncpa [#allocation4 + $0x1], 0  ;;  %s2078_s21 = smov 0   ;;  %s2080_s22 = smov 0  }
   0x7   :  { %s2082_s23 = smov 0   ;;  %s2084_s24 = smov 0  }
   0x8 LB: > { %s2099_s25 = sadd.s32 4294967295, %s2024_s24   ;;  %s1445_s26 = sadd.s32 4294967294, %s2024_s24   ;;  %s2024_s24 = sphi %s2084_s24, %s2590_s24   ;;  %s2020_s23 = sphi %s2082_s23, %s2589_s23   ;;  %s2016_s22 = sphi %s2080_s22, %s2588_s22   ;;  %s2012_s21 = sphi %s2078_s21, %s2587_s21  }
   0x9   : > { %s2103_s27 = sadd.s32 1, %s2024_s24   ;;  %s93_s28 = sadd.s32 1, %s2020_s23 }
   0xa   : > { %s90_s29 = ssub.s32 %s2024_s24, %s2103_s27  ;;  %p100_p0 = scmp.ne.s32.totalorder %s2020_s23, %s2016_s22 }
   0xb   : > { %p91_p1 = scmp.eq.s32.totalorder %s90_s29, 0  ;;  %p101_p2 = scmp.eq.s32.totalorder %s2024_s24, 0 }
   0xc   : > { %p106_p3 = scmp.ne.s32.totalorder %s2016_s22, %s2012_s21  ;;  %p2561_p4 = scmp.eq.s32.totalorder %s2099_s25, 0 }
   0xd   : > { %s2115_s30 = scalar_select %p91_p1, %s2020_s23, %s93_s28  }
   0xe   : > { %p2117_p5 = por %p101_p2, %p100_p0  ;;  %p2123_p6 = por %p2561_p4, %p106_p3 }
   0xf   : > { %p182_p7 = scmp.eq.s32.totalorder %s2099_s25, 1  ;;  %p188_p8 = scmp.eq.s32.totalorder %s1445_s26, 1 }
  0x10   : > { %s2568_s7 = scalar_select %p2117_p5, 1, 0 }
  0x11   : > { %s2569_s8 = scalar_select %p2123_p6, 1, 0 }
  0x12   : > { %p1446_p9 = scmp.ge.s32.totalorder %s2024_s24, 1  ;;  %p195_p10 = scmp.lt.s32.totalorder %s2024_s24, 3 }
  0x13   : > { %p2130_p11 = por %p182_p7, %p100_p0  ;;  %p2134_p12 = por %p188_p8, %p106_p3 }
  0x14   : > { %p2138_p13 = pnand %p1446_p9, %p195_p10  ;;  %s2026_s12 = smov [#allocation2]  }
  0x15   : > { %s2570_s9 = scalar_select %p2130_p11, 1, 0 }
  0x16   : > { %s2571_s10 = scalar_select %p2134_p12, 1, 0 }
  0x17   : > { %s2572_s11 = scalar_select %p2138_p13, 1, 0 }
  0x18   : > { %p1667_p1 = pneg %p2138_p13  ;;  %s207_s13 = sshll.u32 %s2026_s12, 4  ;;  %s208_s13 = int_to_ptr.vmem [resolvable:$true] %s207_s13 }
  0x19   : > { %s2574_s0 = sld [smem:[#allocation13_spill]] }
  0x1a   : > { %p2146_p2 = pnand %p1667_p1, %p2561_p4 }
  0x1c   : > { %p1872_p3 = pneg %p2146_p2 }
  0x1f   : > { %s1870_s17 = scalar_lea.hbm %s2574_s0, 1024 }
  0x20   : > { %p1871_p0 = scmp.ne.s32.totalorder %s2574_s0, %s1870_s17  ;;  %p1877_p9 = scmp.lt.u32.totalorder %s1870_s17, %s2574_s0 }
  0x22   : > { %p1873_p7 = pnand %p1872_p3, %p1871_p0 }
  0x24   : > { %p1874_p8 = pneg %p1873_p7 }
  0x26   : > { %p1879_p10 = pnand %p1877_p9, %p1874_p8 }
  0x28   : > { %1882 = shalt.err (!%p1879_p10)
}
  0x29   : > { %s1883_s28 = scalar_lea.vmem %s208_s13, 1024  ;;  %p1891_p11 = scmp.lt.s32.totalorder %s208_s13, %s208_s13 }
  0x2a   : > { %p1884_p1 = scmp.ne.s32.totalorder %s208_s13, %s1883_s28  ;;  %p1892_p6 = scmp.lt.s32.totalorder %s1883_s28, %s1883_s28 }
  0x2c   : > { %p1886_p4 = pnand %p1884_p1, %p1872_p3  ;;  %p1893_p13 = por %p1892_p6, %p1891_p11 }
  0x2e   : > { %p1887_p12 = pneg %p1886_p4 }
  0x30   : > { %p1894_p5 = pnand %p1893_p13, %p1887_p12 }
  0x32   : > { %1897 = shalt.err (!%p1894_p5)
}
  0x33   : > { %s2027_s29 = smov 64   ;;  %s2028_s12 = smov 4  }
  0x34   : > { %1670 = dma.hbm_to_vmem [thread:$0]  (!%p2146_p2), %s2574_s0, 1024, %s208_s13, [#allocation3], %s2027_s29, %s2027_s29, %s2028_s12  }
  0x35   : > { %p1448_p0 = scmp.ge.s32.totalorder %s2024_s24, 2 }
  0x36   : > { %s227_s17 = sand.u32 (!%p1448_p0), 1, %s2024_s24   ;;  %s2171_s18 = sand.u32 (!%p1448_p0), 1, %s2020_s23  }
  0x37   : > { %223 = sbr.rel (%p1448_p0) target bundleno = 120 (0x78), region = 28  ;;  %s1449_s19 = sshll.u32 (!%p1448_p0), %s2171_s18, 6 }
  0x38   : > { %s1450_s20 = sshll.u32 (!%p1448_p0), %s2024_s24, 6  ;;  %s231_s13 = scalar_lea.vmem (!%p1448_p0), [#allocation5], %s1449_s19 }
  0x39   : > { %s2178_s28 = scalar_lea.hbm (!%p1448_p0), %s2557_s3, %s1450_s20  ;;  %s237_s29 = sshll.u32 (!%p1448_p0), %s231_s13, 4  ;;  %s2180_s29 = int_to_ptr.vmem [resolvable:$true] %s237_s29 }
  0x3a   : > { %s2182_s12 = scalar_lea.sflag (!%p1448_p0), [#allocation6], %s227_s17  ;;  %s1898_s15 = scalar_lea.hbm (!%p1448_p0), %s2178_s28, 1024 }
  0x3b   : > { %p1899_p4 = scmp.ne.s32.totalorder (!%p1448_p0), %s2178_s28, %s1898_s15  ;;  %p2575_p5 = scmp.ne.s32.totalorder (!%p1448_p0), %s2568_s7, 0 }
  0x3c   : > { %s1902_s20 = scalar_lea.hbm (!%p1448_p0), %s2557_s3, 2048  ;;  %p1903_p12 = scmp.lt.u32.totalorder (!%p1448_p0), %s2178_s28, %s2557_s3 }
  0x3d   : > { %p1900_p6 = pnand (!%p1448_p0), %p1899_p4, %p2575_p5  ;;  %p1904_p13 = scmp.lt.u32.totalorder (!%p1448_p0), %s1902_s20, %s1898_s15 }
  0x3e   : > { %p1906_p3 = scmp.lt.u32.totalorder %s1898_s15, %s2178_s28 }
  0x3f   : > { %p1901_p11 = pneg %p1900_p6  ;;  %p1905_p2 = por %p1904_p13, %p1903_p12 }
  0x41   : > { %p1907_p7 = por %p1906_p3, %p1905_p2 }
  0x43   : > { %p1908_p8 = pnand %p1907_p7, %p1901_p11 }
  0x45   : > { %1911 = shalt.err (!%p1908_p8)
}
  0x46   : > { %s1912_s17 = scalar_lea.vmem %s2180_s29, 1024  ;;  %s2029_s0 = smov [#allocation5]  }
  0x47   : > { %p1913_p9 = scmp.ne.s32.totalorder %s2180_s29, %s1912_s17  ;;  %s1916_s19 = sshll.u32 %s2029_s0, 4  ;;  %s1917_s19 = int_to_ptr.vmem [resolvable:$false] %s1916_s19 }
  0x48   : > { %s1918_s13 = scalar_lea.vmem %s1917_s19, 2048  ;;  %p1919_p4 = scmp.lt.s32.totalorder %s2180_s29, %s1917_s19 }
  0x49   : > { %p1914_p10 = pnand %p1913_p9, %p2575_p5  ;;  %p1920_p6 = scmp.lt.s32.totalorder %s1918_s13, %s1912_s17 }
  0x4b   : > { %p1915_p1 = pneg %p1914_p10  ;;  %p1921_p12 = por %p1920_p6, %p1919_p4 }
  0x4d   : > { %p1922_p13 = pnand %p1921_p12, %p1915_p1 }
  0x4f   : > { %1925 = shalt.err (!%p1922_p13)
}
  0x50   : > { %s2030_s15 = smov 128   ;;  %s2031_s16 = smov 64  }
  0x51   : > { %s2032_s20 = smov 4   ;;  %246 = sbr.rel (!%p2575_p5) target bundleno = 94 (0x5e), region = 36 }
  0x52   : > { %1659 = dma.hbm_to_vmem [thread:$0]  (%p2575_p5), %s2178_s28, 1024, %s2180_s29, %s2182_s12, %s2030_s15, %s2031_s16, %s2032_s20  }
  0x53   : > { %s1451_s14 = sshll.u32 (%p2575_p5), %s2171_s18, 7  ;;  %s1452_s26 = sshll.u32 (%p2575_p5), %s2024_s24, 3 }
  0x54   : > { %s2214_s19 = scalar_lea.vmem (%p2575_p5), %s2558_s4, %s1452_s26  ;;  %s250_s28 = scalar_lea.vmem (%p2575_p5), [#allocation7], %s1451_s14 }
  0x55   : > { %v310_v0 = vld [vmem:[%s2214_s19] sm:$0xff] (%p2575_p5)  ;;  %v312_v1 = vld [vmem:[%s2214_s19 + $0x10] sm:$0xff] (%p2575_p5) }
  0x56   : > { %v314_v2 = vld [vmem:[%s2214_s19 + $0x20] sm:$0xff] (%p2575_p5)  ;;  %311 = vst [vmem:[%s250_s28] sm:$0xff] (%p2575_p5), %v310_v0  ;;  %313 = vst [vmem:[%s250_s28 + $0x8] sm:$0xff] (%p2575_p5), %v312_v1  ;;  %v316_v3 = vld [vmem:[%s2214_s19 + $0x30] sm:$0xff] (%p2575_p5) }
  0x57   : > { %315 = vst [vmem:[%s250_s28 + $0x10] sm:$0xff] (%p2575_p5), %v314_v2  ;;  %v318_v4 = vld [vmem:[%s2214_s19 + $0x40] sm:$0xff] (%p2575_p5)  ;;  %v320_v5 = vld [vmem:[%s2214_s19 + $0x50] sm:$0xff] (%p2575_p5)  ;;  %317 = vst [vmem:[%s250_s28 + $0x18] sm:$0xff] (%p2575_p5), %v316_v3 }
  0x58   : > { %319 = vst [vmem:[%s250_s28 + $0x20] sm:$0xff] %v318_v4  ;;  %321 = vst [vmem:[%s250_s28 + $0x28] sm:$0xff] %v320_v5  ;;  %v322_v6 = vld [vmem:[%s2214_s19 + $0x60] sm:$0xff]  ;;  %v324_v7 = vld [vmem:[%s2214_s19 + $0x70] sm:$0xff] }
  0x59   : > { %v326_v8 = vld [vmem:[%s2214_s19 + $0x80] sm:$0xff]  ;;  %323 = vst [vmem:[%s250_s28 + $0x30] sm:$0xff] %v322_v6  ;;  %325 = vst [vmem:[%s250_s28 + $0x38] sm:$0xff] %v324_v7  ;;  %v328_v9 = vld [vmem:[%s2214_s19 + $0x90] sm:$0xff] }
  0x5a   : > { %327 = vst [vmem:[%s250_s28 + $0x40] sm:$0xff] %v326_v8  ;;  %v330_v10 = vld [vmem:[%s2214_s19 + $0xa0] sm:$0xff]  ;;  %v332_v11 = vld [vmem:[%s2214_s19 + $0xb0] sm:$0xff]  ;;  %329 = vst [vmem:[%s250_s28 + $0x48] sm:$0xff] %v328_v9 }
  0x5b   : > { %331 = vst [vmem:[%s250_s28 + $0x50] sm:$0xff] %v330_v10  ;;  %333 = vst [vmem:[%s250_s28 + $0x58] sm:$0xff] %v332_v11  ;;  %v334_v12 = vld [vmem:[%s2214_s19 + $0xc0] sm:$0xff]  ;;  %v336_v13 = vld [vmem:[%s2214_s19 + $0xd0] sm:$0xff] }
  0x5c   : > { %v338_v14 = vld [vmem:[%s2214_s19 + $0xe0] sm:$0xff]  ;;  %335 = vst [vmem:[%s250_s28 + $0x60] sm:$0xff] %v334_v12  ;;  %337 = vst [vmem:[%s250_s28 + $0x68] sm:$0xff] %v336_v13  ;;  %v340_v15 = vld [vmem:[%s2214_s19 + $0xf0] sm:$0xff] }
  0x5d   : > { %339 = vst [vmem:[%s250_s28 + $0x70] sm:$0xff] %v338_v14  ;;  %341 = vst [vmem:[%s250_s28 + $0x78] sm:$0xff] %v340_v15 }
  0x5e PF: > { %s1453_s29 = sshll.u32 %s2171_s18, 7  ;;  %s1454_s13 = sshll.u32 %s2024_s24, 7 }
  0x5f   : > { %s2237_s14 = scalar_lea.hbm %s2559_s5, %s1454_s13  ;;  %s352_s26 = scalar_lea.vmem [#allocation8], %s1453_s29 }
  0x60   : > { %s358_s17 = sshll.u32 %s352_s26, 4  ;;  %s1926_s0 = scalar_lea.hbm %s2237_s14, 2048  ;;  %s2239_s17 = int_to_ptr.vmem [resolvable:$true] %s358_s17 }
  0x61   : > { %p1927_p5 = scmp.ne.s32.totalorder %s2237_s14, %s1926_s0  ;;  %p2576_p11 = scmp.ne.s32.totalorder %s2568_s7, 0 }
  0x62   : > { %s1930_s28 = scalar_lea.hbm %s2559_s5, 4096  ;;  %p1931_p7 = scmp.lt.u32.totalorder %s2237_s14, %s2559_s5 }
  0x63   : > { %p1928_p2 = pnand %p1927_p5, %p2576_p11  ;;  %p1932_p8 = scmp.lt.u32.totalorder %s1930_s28, %s1926_s0 }
  0x64   : > { %p1934_p10 = scmp.lt.u32.totalorder %s1926_s0, %s2237_s14 }
  0x65   : > { %p1929_p3 = pneg %p1928_p2  ;;  %p1933_p9 = por %p1932_p8, %p1931_p7 }
  0x67   : > { %p1935_p1 = por %p1934_p10, %p1933_p9 }
  0x69   : > { %p1936_p4 = pnand %p1935_p1, %p1929_p3 }
  0x6b   : > { %1939 = shalt.err (!%p1936_p4)
}
  0x6c   : > { %s1940_s29 = scalar_lea.vmem %s2239_s17, 2048  ;;  %s2033_s20 = smov [#allocation8]  }
  0x6d   : > { %p1941_p6 = scmp.ne.s32.totalorder %s2239_s17, %s1940_s29  ;;  %s1944_s26 = sshll.u32 %s2033_s20, 4  ;;  %s1945_s26 = int_to_ptr.vmem [resolvable:$false] %s1944_s26 }
  0x6e   : > { %s1946_s18 = scalar_lea.vmem %s1945_s26, 4096  ;;  %p1947_p5 = scmp.lt.s32.totalorder %s2239_s17, %s1945_s26 }
  0x6f   : > { %p1942_p12 = pnand %p1941_p6, %p2576_p11  ;;  %p1948_p2 = scmp.lt.s32.totalorder %s1946_s18, %s1940_s29 }
  0x71   : > { %p1943_p13 = pneg %p1942_p12  ;;  %p1949_p7 = por %p1948_p2, %p1947_p5 }
  0x73   : > { %p1950_p8 = pnand %p1949_p7, %p1943_p13 }
  0x75   : > { %1953 = shalt.err (!%p1950_p8)
}
  0x76   : > { %s2034_s0 = smov 256   ;;  %s2035_s19 = smov 8  }
  0x77   : > { %1660 = dma.hbm_to_vmem [thread:$0]  (%p2576_p11), %s2237_s14, 2048, %s2239_s17, %s2182_s12, %s2034_s0, %s2030_s15, %s2035_s19  }
  0x78 PF: > { %p2577_p3 = scmp.ne.s32.totalorder %s2572_s11, 0 }
  0x79   : > { %p2578_p9 = scmp.eq.s32.totalorder (!%p2577_p3), %s2099_s25, 0 }
  0x7a   : > { %370 = sbr.rel (%p2577_p3) target bundleno = 733 (0x2dd), region = 78 }
  0x81   : > { %1999 = dma.done.wait (%p2578_p9), [#allocation3], 1024   ;;  %p2579_p10 = pmov %p2578_p9 }
  0x82   : > { %s376_s28 = sand.u32 1, %s2099_s25   ;;  %s2272_s16 = sand.u32 1, %s2016_s22  }
  0x83   : > { %2001 = vsyncadd (%p2579_p10), [#allocation3], 4294966272  ;;  %s1457_s7 = sshll.u32 %s2272_s16, 6  ;;  %s377_s13 = scalar_lea.sflag [#allocation6], %s376_s28 }
  0x84   : > { %s2275_s12 = scalar_lea.vmem [#allocation5], %s1457_s7  ;;  %p2580_p11 = scmp.ne.s32.totalorder %s2569_s8, 0 }
  0x86   : > { %2003 = dma.done.wait (%p2580_p11), %s377_s13, 3072  }
  0x87   : > { %2005 = vsyncadd (%p2580_p11), %s377_s13, 4294964224  ;;  %v2036_v16 = vmov 0   ;;  %v1726_v17 = vld [vmem:[%s2275_s12] sm:$0xff]   ;;  %v1727_v18 = vld [vmem:[%s2275_s12 + $0x8] sm:$0xff]   ;;  %s2394_s29 = sshll.u32 %s2272_s16, 7  ;;  %s1558_s0 = sshll.u32 %s2099_s25, 7 }
  0x88   : > { %1724 = vset.pattern.permute.xlu0 %v2036_v16  ;;  %1725 = vset.pattern.permute.xlu1 %v2036_v16  ;;  %v1728_v19 = vld [vmem:[%s2275_s12 + $0x10] sm:$0xff]   ;;  %v515_v20 = vld [vmem:[%s2555_s1] sm:$0xff]  ;;  %v1729_v21 = vld [vmem:[%s2275_s12 + $0x18] sm:$0xff]   ;;  %s2399_s20 = scalar_lea.vmem [#allocation7], %s2394_s29  ;;  %s2450_s26 = scalar_lea.vmem [#allocation8], %s2394_s29 }
  0x89   : > { %1593 = vmatprep.subr.bf16.mxu0 %v1726_v17  ;;  %533 = vperm.xlu0 %1724, %v515_v20   ;;  %v516_v22 = vld [vmem:[%s2555_s1 + $0x8] sm:$0xff]  ;;  %v517_v23 = vld [vmem:[%s2555_s1 + $0x10] sm:$0xff]  ;;  %v2294_v24 = vld [vmem:[#allocation2] sm:$0xff]   ;;  %s2458_s18 = scalar_lea.vmem [#allocation9], %s2394_s29  ;;  %s2501_s7 = scalar_lea.hbm %s2560_s6, %s1558_s0 }
  0x8a   : > { %1594 = vmatpush3.bf16.msra.mxu0 %v1726_v17  ;;  %543 = vperm.xlu1 %1725, %v517_v23   ;;  %v518_v25 = vld [vmem:[%s2555_s1 + $0x18] sm:$0xff]  ;;  %v1730_v26 = vld [vmem:[%s2275_s12 + $0x20] sm:$0xff]   ;;  %v1731_v28 = vld [vmem:[%s2275_s12 + $0x28] sm:$0xff]   ;;  %s1322_s19 = sshll.u32 %s2458_s18, 4  ;;  %s1310_s25 = scalar_lea.sflag [#allocation4], %s2272_s16  ;;  %s2505_s19 = int_to_ptr.vmem [resolvable:$true] %s1322_s19 }
  0x8b   : > { %1595 = vmatprep.subr.bf16.mxu0 %v1727_v18  ;;  %v519_v27 = vld [vmem:[%s2555_s1 + $0x20] sm:$0xff]  ;;  %1609 = vmatprep.mubr.bf16.mxu0 %v2294_v24  ;;  %v520_v29 = vld [vmem:[%s2555_s1 + $0x28] sm:$0xff]  ;;  %v521_v30 = vld [vmem:[%s2555_s1 + $0x30] sm:$0xff]  ;;  %s1954_s13 = scalar_lea.vmem %s2505_s19, 2048  ;;  %p2585_p4 = scmp.ne.s32.totalorder %s2570_s9, 0 }
  0x8c   : > { %v1732_v31 = vld [vmem:[%s2275_s12 + $0x30] sm:$0xff]   ;;  %v522_v32 = vld [vmem:[%s2555_s1 + $0x38] sm:$0xff]  ;;  %v523_v33 = vld [vmem:[%s2555_s1 + $0x40] sm:$0xff]  ;;  %p1955_p1 = scmp.ne.s32.totalorder %s2505_s19, %s1954_s13  ;;  %s2039_s11 = smov [#allocation9]  }
  0x8d   : > { %538 = vperm.xlu0 %1724, %v516_v22   ;;  %v524_v34 = vld [vmem:[%s2555_s1 + $0x48] sm:$0xff]  ;;  %v1733_v35 = vld [vmem:[%s2275_s12 + $0x38] sm:$0xff]   ;;  %v525_v36 = vld [vmem:[%s2555_s1 + $0x50] sm:$0xff]  ;;  %s1958_s15 = sshll.u32 %s2039_s11, 4  ;;  %s1959_s15 = int_to_ptr.vmem [resolvable:$false] %s1958_s15 }
  0x8e   : > { %1596 = vmatpush3.bf16.msra.mxu0 %v1727_v18  ;;  %548 = vperm.xlu1 %1725, %v518_v25   ;;  %v526_v37 = vld [vmem:[%s2555_s1 + $0x58] sm:$0xff]  ;;  %v527_v38 = vld [vmem:[%s2555_s1 + $0x60] sm:$0xff]  ;;  %v1735_v39 = vld [vmem:[#allocation2 + $0x8] sm:$0xff]   ;;  %p1956_p6 = pnand %p1955_p1, %p2585_p4  ;;  %s1960_s8 = scalar_lea.vmem %s1959_s15, 4096 }
  0x8f   : > { %1597 = vmatprep.subr.bf16.mxu0 %v1728_v19  ;;  %v1736_v40 = vld [vmem:[#allocation2 + $0x10] sm:$0xff]   ;;  %v528_v41 = vld [vmem:[%s2555_s1 + $0x68] sm:$0xff]  ;;  %v530_v43 = vld [vmem:[%s2555_s1 + $0x78] sm:$0xff]  ;;  %p1961_p13 = scmp.lt.s32.totalorder %s2505_s19, %s1959_s15  ;;  %p1962_p5 = scmp.lt.s32.totalorder %s1960_s8, %s1954_s13 }
  0x90   : > { %v529_v42 = vld [vmem:[%s2555_s1 + $0x70] sm:$0xff]  ;;  %v1737_v44 = vld [vmem:[#allocation2 + $0x18] sm:$0xff]   ;;  %v1738_v45 = vld [vmem:[#allocation2 + $0x20] sm:$0xff]   ;;  %p1957_p12 = pneg %p1956_p6 }
  0x91   : > { %553 = vperm.xlu0 %1724, %v519_v27   ;;  %v611_v46 = vld [vmem:[%s2556_s2] sm:$0xff]  ;;  %v612_v47 = vld [vmem:[%s2556_s2 + $0x8] sm:$0xff]  ;;  %v1740_v49 = vld [vmem:[#allocation2 + $0x30] sm:$0xff]   ;;  %p1963_p2 = por %p1962_p5, %p1961_p13 }
  0x92   : > { %1598 = vmatpush3.bf16.msra.mxu0 %v1728_v19  ;;  %558 = vperm.xlu1 %1725, %v520_v29   ;;  %v1739_v48 = vld [vmem:[#allocation2 + $0x28] sm:$0xff]   ;;  %v613_v50 = vld [vmem:[%s2556_s2 + $0x10] sm:$0xff]  ;;  %v614_v51 = vld [vmem:[%s2556_s2 + $0x18] sm:$0xff] }
  0x93   : > { %1599 = vmatprep.subr.bf16.mxu0 %v1729_v21  ;;  %v1741_v52 = vld [vmem:[#allocation2 + $0x38] sm:$0xff]   ;;  %v615_v53 = vld [vmem:[%s2556_s2 + $0x20] sm:$0xff]  ;;  %v616_v54 = vld [vmem:[%s2556_s2 + $0x28] sm:$0xff]  ;;  %p1964_p7 = pnand %p1963_p2, %p1957_p12 }
  0x94   : > { %v617_v55 = vld [vmem:[%s2556_s2 + $0x30] sm:$0xff]  ;;  %v618_v56 = vld [vmem:[%s2556_s2 + $0x38] sm:$0xff]  ;;  %v619_v57 = vld [vmem:[%s2556_s2 + $0x40] sm:$0xff] }
  0x95   : > { %563 = vperm.xlu0 %1724, %v521_v30   ;;  %v620_v58 = vld [vmem:[%s2556_s2 + $0x48] sm:$0xff]  ;;  %v621_v59 = vld [vmem:[%s2556_s2 + $0x50] sm:$0xff]  ;;  %v622_v60 = vld [vmem:[%s2556_s2 + $0x58] sm:$0xff] }
  0x96   : > { %1600 = vmatpush3.bf16.msra.mxu0 %v1729_v21  ;;  %568 = vperm.xlu1 %1725, %v522_v32   ;;  %v623_v61 = vld [vmem:[%s2556_s2 + $0x60] sm:$0xff]  ;;  %v624_v62 = vld [vmem:[%s2556_s2 + $0x68] sm:$0xff]  ;;  %v625_v63 = vld [vmem:[%s2556_s2 + $0x70] sm:$0xff] }
  0x97   : > { %1601 = vmatprep.subr.bf16.mxu0 %v1730_v26  ;;  %v626_v0 = vld [vmem:[%s2556_s2 + $0x78] sm:$0xff] }
  0x99   : > { %573 = vperm.xlu0 %1724, %v523_v33  }
  0x9a   : > { %1602 = vmatpush3.bf16.msra.mxu0 %v1730_v26  ;;  %578 = vperm.xlu1 %1725, %v524_v34  }
  0x9b   : > { %1603 = vmatprep.subr.bf16.mxu0 %v1731_v28 }
  0x9d   : > { %583 = vperm.xlu0 %1724, %v525_v36  }
  0x9e   : > { %1604 = vmatpush3.bf16.msra.mxu0 %v1731_v28  ;;  %588 = vperm.xlu1 %1725, %v526_v37  }
  0x9f   : > { %1605 = vmatprep.subr.bf16.mxu0 %v1732_v31 }
  0xa1   : > { %593 = vperm.xlu0 %1724, %v527_v38  }
  0xa2   : > { %1606 = vmatpush3.bf16.msra.mxu0 %v1732_v31  ;;  %598 = vperm.xlu1 %1725, %v528_v41  }
  0xa3   : > { %1607 = vmatprep.subr.bf16.mxu0 %v1733_v35 }
  0xa5   : > { %603 = vperm.xlu0 %1724, %v529_v42  }
  0xa6   : > { %1608 = vmatpush3.bf16.msra.mxu0 %v1733_v35  ;;  %608 = vperm.xlu1 %1725, %v530_v43  }
  0xa9   : > { %1610 = vmatmul.mubr.bf16.vlgmr.msra.gmra.mrb[0].mxu0 %v1735_v39 }
  0xaa   : > { %1613 = vmatprep.mubr.bf16.mxu0 %v1736_v40  ;;  %629 = vperm.xlu1 %1725, %v611_v46  }
  0xae   : > { %634 = vperm.xlu1 %1725, %v612_v47  }
  0xb1   : > { %1614 = vmatmul.mubr.bf16.gmra.mrb[4].mxu0 %v1737_v44 }
  0xb2   : > { %1617 = vmatprep.mubr.bf16.mxu0 %v1738_v45  ;;  %639 = vperm.xlu1 %1725, %v613_v50  }
  0xb6   : > { %644 = vperm.xlu1 %1725, %v614_v51  }
  0xb9   : > { %1618 = vmatmul.mubr.bf16.gmra.mrb[8].mxu0 %v1739_v48 }
  0xba   : > { %1621 = vmatprep.mubr.bf16.mxu0 %v1740_v49  ;;  %649 = vperm.xlu1 %1725, %v615_v53  }
  0xbe   : > { %654 = vperm.xlu1 %1725, %v616_v54  }
  0xc1   : > { %1622 = vmatmul.mubr.bf16.gmra.mrb[12].mxu0 %v1741_v52 }
  0xc2   : > { %659 = vperm.xlu1 %1725, %v617_v55  }
  0xc3   : > { %499 = vxpose.xlu0.c.b16.start [1/8] %v2294_v24, 128 }
  0xc6   : > { %664 = vperm.xlu1 %1725, %v618_v56  }
  0xc7   : > { %500 = vxpose.xlu0.c.b16.cont [2/8] %v1735_v39, 128 }
  0xca   : > { %669 = vperm.xlu1 %1725, %v619_v57  }
  0xcb   : > { %501 = vxpose.xlu0.c.b16.cont [3/8] %v1736_v40, 128 }
  0xce   : > { %674 = vperm.xlu1 %1725, %v620_v58  }
  0xcf   : > { %502 = vxpose.xlu0.c.b16.cont [4/8] %v1737_v44, 128 }
  0xd2   : > { %679 = vperm.xlu1 %1725, %v621_v59  }
  0xd3   : > { %503 = vxpose.xlu0.c.b16.cont [5/8] %v1738_v45, 128 }
  0xd6   : > { %684 = vperm.xlu1 %1725, %v622_v60  }
  0xd7   : > { %504 = vxpose.xlu0.c.b16.cont [6/8] %v1739_v48, 128 }
  0xda   : > { %689 = vperm.xlu1 %1725, %v623_v61  }
  0xdb   : > { %505 = vxpose.xlu0.c.b16.cont [7/8] %v1740_v49, 128 }
  0xde   : > { %694 = vperm.xlu1 %1725, %v624_v62  }
  0xdf   : > { %506 = vxpose.xlu0.c.b16.end [8/8] %v1741_v52, 128 }
  0xe2   : > { %699 = vperm.xlu1 %1725, %v625_v63  }
  0xe8   : > { %704 = vperm.xlu0 %1724, %v626_v0  }
 0x108   : > { %v534_v1 = vpop.permute.xlu0 %533 }
 0x109   : > { %v544_v10 = vpop.permute.xlu1 %543 }
 0x10c   : > { %v539_v2 = vpop.permute.xlu0 %538 }
 0x10d   : > { %v549_v11 = vpop.permute.xlu1 %548 }
 0x110   : > { %v554_v3 = vpop.permute.xlu0 %553 }
 0x111   : > { %v559_v12 = vpop.permute.xlu1 %558 }
 0x114   : > { %v564_v4 = vpop.permute.xlu0 %563 }
 0x115   : > { %v569_v16 = vpop.permute.xlu1 %568 }
 0x118   : > { %v574_v5 = vpop.permute.xlu0 %573 }
 0x119   : > { %v579_v26 = vpop.permute.xlu1 %578 }
 0x11c   : > { %v584_v6 = vpop.permute.xlu0 %583 }
 0x11d   : > { %v589_v38 = vpop.permute.xlu1 %588 }
 0x120   : > { %v2389_v7 = vpop.permute.xlu0 %593 }
 0x121   : > { %v599_v56 = vpop.permute.xlu1 %598 }
 0x124   : > { %v2391_v8 = vpop.permute.xlu0 %603 }
 0x129   : > { %v507_v9 = vpop.trf.xlu0 }
 0x12a   : > { %1641 = vmatprep.mubr.bf16.mxu1 %v507_v9 }
 0x17c   : > { %v1611_v13 = vpop.f32.mrb[0].mxu0 }
 0x17d   : > { %v830_v14 = vadd.f32 %v1611_v13, %v544_v10  ;;  %v821_v15 = vpop.f32.mrb[1].mxu0 }
 0x17e   : > { %v822_v17 = vadd.f32 %v821_v15, %v534_v1  ;;  %v1612_v18 = vpop.f32.mrb[2].mxu0 }
 0x17f   : > { %v1479_v19 = vmul.f32 -1.442695, %v830_v14  ;;  %v833_v20 = vadd.f32 %v1612_v18, %v549_v11  ;;  %v824_v21 = vpop.f32.mrb[3].mxu0 }
 0x180   : > { %v1477_v22 = vmul.f32 -1.442695, %v822_v17  ;;  %v825_v23 = vadd.f32 %v824_v21, %v539_v2  ;;  %v723_v21 = vld [vmem:[%s2399_s20] sm:$0xff] }
 0x181   : > { %1742 = vpow2.f32 %v1479_v19  ;;  %v1480_v24 = vmul.f32 -1.442695, %v833_v20  ;;  %v726_v19 = vld [vmem:[%s2399_s20 + $0x18] sm:$0xff] }
 0x182   : > { %1744 = vpow2.f32 %v1477_v22  ;;  %v1478_v25 = vmul.f32 -1.442695, %v825_v23  ;;  %v724_v22 = vld [vmem:[%s2399_s20 + $0x8] sm:$0xff] }
 0x183   : > { %1746 = vpow2.f32 %v1480_v24 }
 0x184   : > { %1748 = vpow2.f32 %v1478_v25  ;;  %v1615_v27 = vpop.f32.mrb[4].mxu0 }
 0x185   : > { %v846_v28 = vadd.f32 %v1615_v27, %v564_v4  ;;  %v837_v29 = vpop.f32.mrb[5].mxu0 }
 0x186   : > { %v838_v30 = vadd.f32 %v837_v29, %v554_v3  ;;  %v1616_v31 = vpop.f32.mrb[6].mxu0 }
 0x187   : > { %v1483_v32 = vmul.f32 -1.442695, %v846_v28  ;;  %v849_v33 = vadd.f32 %v1616_v31, %v569_v16  ;;  %v840_v34 = vpop.f32.mrb[7].mxu0 }
 0x188   : > { %v1481_v35 = vmul.f32 -1.442695, %v838_v30  ;;  %v841_v36 = vadd.f32 %v840_v34, %v559_v12 }
 0x189   : > { %1750 = vpow2.f32 %v1483_v32  ;;  %v1484_v37 = vmul.f32 -1.442695, %v849_v33  ;;  %v2037_v32 = vmov 1.0|1.0  }
 0x18a   : > { %1752 = vpow2.f32 %v1481_v35  ;;  %v1482_v39 = vmul.f32 -1.442695, %v841_v36 }
 0x18b   : > { %v1743_v40 = vpop.eup %1742  ;;  %1754 = vpow2.f32 %v1484_v37  ;;  %v729_v37 = vld [vmem:[%s2399_s20 + $0x30] sm:$0xff] }
 0x18c   : > { %v1745_v41 = vpop.eup %1744  ;;  %v934_v42 = vadd.f32 1.0, %v1743_v40  ;;  %1756 = vpow2.f32 %v1482_v39  ;;  %v1619_v43 = vpop.f32.mrb[8].mxu0  ;;  %v727_v40 = vld [vmem:[%s2399_s20 + $0x20] sm:$0xff] }
 0x18d   : > { %v1747_v44 = vpop.eup %1746  ;;  %v932_v45 = vadd.f32 1.0, %v1745_v41  ;;  %v862_v46 = vadd.f32 %v1619_v43, %v584_v6  ;;  %v853_v47 = vpop.f32.mrb[9].mxu0  ;;  %v728_v41 = vld [vmem:[%s2399_s20 + $0x28] sm:$0xff] }
 0x18e   : > { %v1749_v48 = vpop.eup %1748  ;;  %1758 = vrcp.f32 %v934_v42  ;;  %v935_v49 = vadd.f32 1.0, %v1747_v44  ;;  %v854_v50 = vadd.f32 %v853_v47, %v574_v5  ;;  %v1620_v51 = vpop.f32.mrb[10].mxu0 }
 0x18f   : > { %1760 = vrcp.f32 %v932_v45  ;;  %v933_v52 = vadd.f32 1.0, %v1749_v48  ;;  %v1487_v53 = vmul.f32 -1.442695, %v862_v46  ;;  %v865_v54 = vadd.f32 %v1620_v51, %v589_v38  ;;  %v856_v55 = vpop.f32.mrb[11].mxu0  ;;  %v609_v6 = vpop.permute.xlu1 %608  ;;  %v730_v38 = vld [vmem:[%s2399_s20 + $0x38] sm:$0xff] }
 0x190   : > { %1762 = vrcp.f32 %v935_v49  ;;  %v1485_v57 = vmul.f32 -1.442695, %v854_v50  ;;  %v857_v58 = vadd.f32 %v856_v55, %v579_v26  ;;  %v734_v55 = vld [vmem:[%s2399_s20 + $0x58] sm:$0xff] }
 0x191   : > { %1764 = vrcp.f32 %v933_v52  ;;  %v1488_v59 = vmul.f32 -1.442695, %v865_v54  ;;  %v733_v54 = vld [vmem:[%s2399_s20 + $0x50] sm:$0xff] }
 0x192   : > { %1766 = vpow2.f32 %v1487_v53  ;;  %v1486_v60 = vmul.f32 -1.442695, %v857_v58  ;;  %v732_v58 = vld [vmem:[%s2399_s20 + $0x48] sm:$0xff] }
 0x193   : > { %v1751_v61 = vpop.eup %1750  ;;  %1768 = vpow2.f32 %v1485_v57  ;;  %v731_v57 = vld [vmem:[%s2399_s20 + $0x40] sm:$0xff] }
 0x194   : > { %v1753_v62 = vpop.eup %1752  ;;  %v938_v63 = vadd.f32 1.0, %v1751_v61  ;;  %1770 = vpow2.f32 %v1488_v59  ;;  %v1623_v0 = vpop.f32.mrb[12].mxu0 }
 0x195   : > { %v1755_v1 = vpop.eup %1754  ;;  %v936_v2 = vadd.f32 1.0, %v1753_v62  ;;  %1772 = vpow2.f32 %v1486_v60  ;;  %v878_v3 = vadd.f32 %v1623_v0, %v2391_v8  ;;  %v869_v4 = vpop.f32.mrb[13].mxu0  ;;  %v725_v8 = vld [vmem:[%s2399_s20 + $0x10] sm:$0xff]  ;;  %v738_v0 = vld [vmem:[%s2399_s20 + $0x78] sm:$0xff] }
 0x196   : > { %v1757_v5 = vpop.eup %1756  ;;  %1774 = vrcp.f32 %v938_v63  ;;  %v939_v9 = vadd.f32 1.0, %v1755_v1  ;;  %v870_v10 = vadd.f32 %v869_v4, %v2389_v7  ;;  %v1624_v11 = vpop.f32.mrb[14].mxu0  ;;  %v737_v63 = vld [vmem:[%s2399_s20 + $0x70] sm:$0xff] }
 0x197   : > { %1776 = vrcp.f32 %v936_v2  ;;  %v937_v12 = vadd.f32 1.0, %v1757_v5  ;;  %v1491_v13 = vmul.f32 -1.442695, %v878_v3  ;;  %v881_v14 = vadd.f32 %v1624_v11, %v609_v6  ;;  %v872_v15 = vpop.f32.mrb[15].mxu0  ;;  %v508_v62 = vpop.trf.xlu0  ;;  %v735_v2 = vld [vmem:[%s2399_s20 + $0x60] sm:$0xff]  ;;  %v736_v3 = vld [vmem:[%s2399_s20 + $0x68] sm:$0xff] }
 0x198   : > { %v1759_v16 = vpop.eup %1758  ;;  %1778 = vrcp.f32 %v939_v9  ;;  %v1489_v17 = vmul.f32 -1.442695, %v870_v10  ;;  %v873_v18 = vadd.f32 %v872_v15, %v599_v56 }
 0x199   : > { %v1761_v20 = vpop.eup %1760  ;;  %1780 = vrcp.f32 %v937_v12  ;;  %v1492_v7 = vmul.f32 -1.442695, %v881_v14  ;;  %vm982_vm0 = vcmp.lt.f32.partialorder %v725_v8, %v1759_v16  ;;  %v630_v14 = vpop.permute.xlu1 %629 }
 0x19a   : > { %v1763_v23 = vpop.eup %1762  ;;  %1782 = vpow2.f32 %v1491_v13  ;;  %v1490_v24 = vmul.f32 -1.442695, %v873_v18  ;;  %vm980_vm2 = vcmp.lt.f32.partialorder %v723_v21, %v1761_v20 }
 0x19b   : > { %v1765_v25 = vpop.eup %1764  ;;  %1784 = vpow2.f32 %v1489_v17  ;;  %vm983_vm1 = vcmp.lt.f32.partialorder %v726_v19, %v1763_v23  ;;  %v509_v6 = vpop.trf.xlu0 }
 0x19c   : > { %v1767_v26 = vpop.eup %1766  ;;  %1786 = vpow2.f32 %v1492_v7  ;;  %vm981_vm3 = vcmp.lt.f32.partialorder %v724_v22, %v1765_v25  ;;  %vm2405_vm4 = vmpackc.low %vm983_vm1, %vm982_vm0 }
 0x19d   : > { %v1769_v28 = vpop.eup %1768  ;;  %v942_v29 = vadd.f32 1.0, %v1767_v26  ;;  %1788 = vpow2.f32 %v1490_v24  ;;  %vm1509_vm5 = vmpackc.low %vm981_vm3, %vm980_vm2  ;;  %v635_v15 = vpop.permute.xlu1 %634 }
 0x19e   : > { %v1771_v30 = vpop.eup %1770  ;;  %v940_v31 = vadd.f32 1.0, %v1769_v28  ;;  %1625 = vmatprep.subr.msk.bf16.mxu1 %vm1509_vm5, %v2037_v32 }
 0x19f   : > { %v1773_v33 = vpop.eup %1772  ;;  %1790 = vrcp.f32 %v942_v29  ;;  %v943_v34 = vadd.f32 1.0, %v1771_v30  ;;  %1626 = vmatpush3.bf16.msk.msra.mxu1 %vm1509_vm5, %v2037_v32  ;;  %v510_v9 = vpop.trf.xlu0 }
 0x1a0   : > { %v1775_v35 = vpop.eup %1774  ;;  %1792 = vrcp.f32 %v940_v31  ;;  %v941_v36 = vadd.f32 1.0, %v1773_v33  ;;  %1627 = vmatprep.subr.msk.bf16.mxu1 %vm2405_vm4, %v2037_v32 }
 0x1a1   : > { %v1777_v39 = vpop.eup %1776  ;;  %1794 = vrcp.f32 %v943_v34  ;;  %vm986_vm6 = vcmp.lt.f32.partialorder %v729_v37, %v1775_v35  ;;  %v640_v16 = vpop.permute.xlu1 %639 }
 0x1a2   : > { %v1779_v42 = vpop.eup %1778  ;;  %1796 = vrcp.f32 %v941_v36  ;;  %vm984_vm8 = vcmp.lt.f32.partialorder %v727_v40, %v1777_v39 }
 0x1a3   : > { %v1781_v43 = vpop.eup %1780  ;;  %1628 = vmatpush3.bf16.msk.msra.mxu1 %vm2405_vm4, %v2037_v32  ;;  %vm987_vm7 = vcmp.lt.f32.partialorder %v730_v38, %v1779_v42  ;;  %v511_v10 = vpop.trf.xlu0 }
 0x1a4   : > { %v1783_v44 = vpop.eup %1782  ;;  %vm985_vm9 = vcmp.lt.f32.partialorder %v728_v41, %v1781_v43  ;;  %vm2421_vm10 = vmpackc.low %vm987_vm7, %vm986_vm6 }
 0x1a5   : > { %v1785_v46 = vpop.eup %1784  ;;  %v946_v47 = vadd.f32 1.0, %v1783_v44  ;;  %vm1513_vm11 = vmpackc.low %vm985_vm9, %vm984_vm8  ;;  %v645_v17 = vpop.permute.xlu1 %644 }
 0x1a6   : > { %v1787_v48 = vpop.eup %1786  ;;  %v944_v49 = vadd.f32 1.0, %v1785_v46  ;;  %1629 = vmatprep.subr.msk.bf16.mxu1 %vm1513_vm11, %v2037_v32 }
 0x1a7   : > { %v1789_v50 = vpop.eup %1788  ;;  %1798 = vrcp.f32 %v946_v47  ;;  %v947_v51 = vadd.f32 1.0, %v1787_v48  ;;  %1630 = vmatpush3.bf16.msk.msra.mxu1 %vm1513_vm11, %v2037_v32  ;;  %v512_v11 = vpop.trf.xlu0 }
 0x1a8   : > { %1800 = vrcp.f32 %v944_v49  ;;  %v945_v52 = vadd.f32 1.0, %v1789_v50  ;;  %1631 = vmatprep.subr.msk.bf16.mxu1 %vm2421_vm10, %v2037_v32 }
 0x1a9   : > { %v1791_v53 = vpop.eup %1790  ;;  %1802 = vrcp.f32 %v947_v51  ;;  %v650_v18 = vpop.permute.xlu1 %649 }
 0x1aa   : > { %v1793_v56 = vpop.eup %1792  ;;  %1804 = vrcp.f32 %v945_v52  ;;  %vm990_vm12 = vcmp.lt.f32.partialorder %v733_v54, %v1791_v53 }
 0x1ab   : > { %v1795_v59 = vpop.eup %1794  ;;  %1632 = vmatpush3.bf16.msk.msra.mxu1 %vm2421_vm10, %v2037_v32  ;;  %vm988_vm14 = vcmp.lt.f32.partialorder %v731_v57, %v1793_v56  ;;  %v513_v12 = vpop.trf.xlu0 }
 0x1ac   : > { %v1797_v60 = vpop.eup %1796  ;;  %vm991_vm13 = vcmp.lt.f32.partialorder %v734_v55, %v1795_v59 }
 0x1ad   : > { %vm989_vm15 = vcmp.lt.f32.partialorder %v732_v58, %v1797_v60  ;;  %vm1519_vm0 = vmpackc.low %vm991_vm13, %vm990_vm12  ;;  %v655_v8 = vpop.permute.xlu1 %654 }
 0x1ae   : > { %vm1517_vm1 = vmpackc.low %vm989_vm15, %vm988_vm14 }
 0x1af   : > { %1633 = vmatprep.subr.msk.bf16.mxu1 %vm1517_vm1, %v2037_v32  ;;  %v514_v13 = vpop.trf.xlu0 }
 0x1b0   : > { %1634 = vmatpush3.bf16.msk.msra.mxu1 %vm1517_vm1, %v2037_v32 }
 0x1b1   : > { %v1799_v61 = vpop.eup %1798  ;;  %1635 = vmatprep.subr.msk.bf16.mxu1 %vm1519_vm0, %v2037_v32  ;;  %v660_v19 = vpop.permute.xlu1 %659 }
 0x1b2   : > { %v1801_v1 = vpop.eup %1800  ;;  %vm994_vm2 = vcmp.lt.f32.partialorder %v737_v63, %v1799_v61 }
 0x1b3   : > { %v1803_v4 = vpop.eup %1802  ;;  %vm992_vm4 = vcmp.lt.f32.partialorder %v735_v2, %v1801_v1 }
 0x1b4   : > { %v1805_v5 = vpop.eup %1804  ;;  %1636 = vmatpush3.bf16.msk.msra.mxu1 %vm1519_vm0, %v2037_v32  ;;  %vm995_vm3 = vcmp.lt.f32.partialorder %v738_v0, %v1803_v4 }
 0x1b5   : > { %vm993_vm5 = vcmp.lt.f32.partialorder %v736_v3, %v1805_v5  ;;  %vm1523_vm6 = vmpackc.low %vm995_vm3, %vm994_vm2  ;;  %v665_v20 = vpop.permute.xlu1 %664 }
 0x1b6   : > { %vm1521_vm7 = vmpackc.low %vm993_vm5, %vm992_vm4 }
 0x1b7   : > { %1637 = vmatprep.subr.msk.bf16.mxu1 %vm1521_vm7, %v2037_v32 }
 0x1b8   : > { %1638 = vmatpush3.bf16.msk.msra.mxu1 %vm1521_vm7, %v2037_v32 }
 0x1b9   : > { %1639 = vmatprep.subr.msk.bf16.mxu1 %vm1523_vm6, %v2037_v32  ;;  %v670_v7 = vpop.permute.xlu1 %669 }
 0x1bc   : > { %1640 = vmatpush3.bf16.msk.msra.mxu1 %vm1523_vm6, %v2037_v32 }
 0x1bd   : > { %v675_v21 = vpop.permute.xlu1 %674 }
 0x1bf   : > { %1642 = vmatmul.mubr.bf16.vlgmr.msra.gmra.mrb[0].mxu1 %v508_v62 }
 0x1c0   : > { %1645 = vmatprep.mubr.bf16.mxu1 %v509_v6 }
 0x1c1   : > { %v680_v22 = vpop.permute.xlu1 %679 }
 0x1c5   : > { %v685_v34 = vpop.permute.xlu1 %684 }
 0x1c7   : > { %1646 = vmatmul.mubr.bf16.gmra.mrb[4].mxu1 %v510_v9 }
 0x1c8   : > { %1649 = vmatprep.mubr.bf16.mxu1 %v511_v10 }
 0x1c9   : > { %v690_v44 = vpop.permute.xlu1 %689 }
 0x1cd   : > { %v695_v58 = vpop.permute.xlu1 %694 }
 0x1cf   : > { %1650 = vmatmul.mubr.bf16.gmra.mrb[8].mxu1 %v512_v11 }
 0x1d0   : > { %1653 = vmatprep.mubr.bf16.mxu1 %v513_v12 }
 0x1d1   : > { %v700_v10 = vpop.permute.xlu1 %699 }
 0x1d7   : > { %1654 = vmatmul.mubr.bf16.gmra.mrb[12].mxu1 %v514_v13 }
 0x292   : > { %v1643_v23 = vpop.f32.mrb[0].mxu1 }
 0x293   : > { %v1095_v24 = vadd.f32 %v1643_v23, %v640_v16  ;;  %v1086_v25 = vpop.f32.mrb[1].mxu1 }
 0x294   : > { %v1087_v26 = vadd.f32 %v1086_v25, %v630_v14  ;;  %v1644_v27 = vpop.f32.mrb[2].mxu1 }
 0x295   : > { %v1527_v28 = vmul.f32 -1.442695, %v1095_v24  ;;  %v1098_v29 = vadd.f32 %v1644_v27, %v645_v17  ;;  %v1089_v30 = vpop.f32.mrb[3].mxu1  ;;  %v1039_v27 = vld [vmem:[%s2450_s26 + $0x18] sm:$0xff] }
 0x296   : > { %v1525_v31 = vmul.f32 -1.442695, %v1087_v26  ;;  %v1090_v32 = vadd.f32 %v1089_v30, %v635_v15 }
 0x297   : > { %1806 = vpow2.f32 %v1527_v28  ;;  %v1528_v33 = vmul.f32 -1.442695, %v1098_v29 }
 0x298   : > { %1808 = vpow2.f32 %v1525_v31  ;;  %v1526_v35 = vmul.f32 -1.442695, %v1090_v32  ;;  %v1037_v31 = vld [vmem:[%s2450_s26 + $0x8] sm:$0xff] }
 0x299   : > { %1810 = vpow2.f32 %v1528_v33 }
 0x29a   : > { %1812 = vpow2.f32 %v1526_v35  ;;  %v1647_v36 = vpop.f32.mrb[4].mxu1 }
 0x29b   : > { %v1111_v37 = vadd.f32 %v1647_v36, %v660_v19  ;;  %v1102_v38 = vpop.f32.mrb[5].mxu1 }
 0x29c   : > { %v1103_v39 = vadd.f32 %v1102_v38, %v650_v18  ;;  %v1648_v40 = vpop.f32.mrb[6].mxu1  ;;  %v705_v18 = vpop.permute.xlu0 %704 }
 0x29d   : > { %v1531_v41 = vmul.f32 -1.442695, %v1111_v37  ;;  %v1114_v42 = vadd.f32 %v1648_v40, %v665_v20  ;;  %v1105_v43 = vpop.f32.mrb[7].mxu1 }
 0x29e   : > { %v1529_v45 = vmul.f32 -1.442695, %v1103_v39  ;;  %v1106_v46 = vadd.f32 %v1105_v43, %v655_v8  ;;  %v1038_v8 = vld [vmem:[%s2450_s26 + $0x10] sm:$0xff] }
 0x29f   : > { %1814 = vpow2.f32 %v1531_v41  ;;  %v1532_v47 = vmul.f32 -1.442695, %v1114_v42 }
 0x2a0   : > { %1816 = vpow2.f32 %v1529_v45  ;;  %v1530_v48 = vmul.f32 -1.442695, %v1106_v46  ;;  %v1042_v45 = vld [vmem:[%s2450_s26 + $0x30] sm:$0xff] }
 0x2a1   : > { %v1807_v49 = vpop.eup %1806  ;;  %1818 = vpow2.f32 %v1532_v47 }
 0x2a2   : > { %v1809_v50 = vpop.eup %1808  ;;  %v1199_v51 = vadd.f32 1.0, %v1807_v49  ;;  %1820 = vpow2.f32 %v1530_v48  ;;  %v1651_v52 = vpop.f32.mrb[8].mxu1  ;;  %v1040_v48 = vld [vmem:[%s2450_s26 + $0x20] sm:$0xff] }
 0x2a3   : > { %v1811_v53 = vpop.eup %1810  ;;  %v1197_v54 = vadd.f32 1.0, %v1809_v50  ;;  %v1127_v55 = vadd.f32 %v1651_v52, %v680_v22  ;;  %v1118_v56 = vpop.f32.mrb[9].mxu1 }
 0x2a4   : > { %v1813_v57 = vpop.eup %1812  ;;  %1822 = vrcp.f32 %v1199_v51  ;;  %v1200_v59 = vadd.f32 1.0, %v1811_v53  ;;  %v1119_v60 = vadd.f32 %v1118_v56, %v670_v7  ;;  %v1652_v61 = vpop.f32.mrb[10].mxu1  ;;  %v1043_v51 = vld [vmem:[%s2450_s26 + $0x38] sm:$0xff] }
 0x2a5   : > { %1824 = vrcp.f32 %v1197_v54  ;;  %v1198_v62 = vadd.f32 1.0, %v1813_v57  ;;  %v1535_v63 = vmul.f32 -1.442695, %v1127_v55  ;;  %v1130_v0 = vadd.f32 %v1652_v61, %v685_v34  ;;  %v1121_v1 = vpop.f32.mrb[11].mxu1  ;;  %v1041_v54 = vld [vmem:[%s2450_s26 + $0x28] sm:$0xff] }
 0x2a6   : > { %1826 = vrcp.f32 %v1200_v59  ;;  %v1533_v2 = vmul.f32 -1.442695, %v1119_v60  ;;  %v1122_v3 = vadd.f32 %v1121_v1, %v675_v21  ;;  %v1036_v21 = vld [vmem:[%s2450_s26] sm:$0xff]  ;;  %v2038_v34 = vmov 0.0  }
 0x2a7   : > { %1828 = vrcp.f32 %v1198_v62  ;;  %v1536_v4 = vmul.f32 -1.442695, %v1130_v0 }
 0x2a8   : > { %1830 = vpow2.f32 %v1535_v63  ;;  %v1534_v5 = vmul.f32 -1.442695, %v1122_v3  ;;  %v1046_v3 = vld [vmem:[%s2450_s26 + $0x50] sm:$0xff] }
 0x2a9   : > { %v1815_v6 = vpop.eup %1814  ;;  %1832 = vpow2.f32 %v1533_v2 }
 0x2aa   : > { %v1817_v9 = vpop.eup %1816  ;;  %v1203_v11 = vadd.f32 1.0, %v1815_v6  ;;  %1834 = vpow2.f32 %v1536_v4  ;;  %v1655_v12 = vpop.f32.mrb[12].mxu1 }
 0x2ab   : > { %v1819_v13 = vpop.eup %1818  ;;  %v1201_v14 = vadd.f32 1.0, %v1817_v9  ;;  %1836 = vpow2.f32 %v1534_v5  ;;  %v1143_v15 = vadd.f32 %v1655_v12, %v700_v10  ;;  %v1134_v16 = vpop.f32.mrb[13].mxu1  ;;  %v1044_v5 = vld [vmem:[%s2450_s26 + $0x40] sm:$0xff]  ;;  %v1047_v10 = vld [vmem:[%s2450_s26 + $0x58] sm:$0xff]  ;;  %v1045_v12 = vld [vmem:[%s2450_s26 + $0x48] sm:$0xff] }
 0x2ac   : > { %v1821_v17 = vpop.eup %1820  ;;  %1838 = vrcp.f32 %v1203_v11  ;;  %v1204_v19 = vadd.f32 1.0, %v1819_v13  ;;  %v1135_v20 = vadd.f32 %v1134_v16, %v690_v44  ;;  %v1656_v7 = vpop.f32.mrb[14].mxu1 }
 0x2ad   : > { %1840 = vrcp.f32 %v1201_v14  ;;  %v1202_v22 = vadd.f32 1.0, %v1821_v17  ;;  %v1539_v23 = vmul.f32 -1.442695, %v1143_v15  ;;  %v1146_v24 = vadd.f32 %v1656_v7, %v705_v18  ;;  %v1137_v25 = vpop.f32.mrb[15].mxu1  ;;  %v1051_v7 = vld [vmem:[%s2450_s26 + $0x78] sm:$0xff] }
 0x2ae   : > { %v1823_v26 = vpop.eup %1822  ;;  %1842 = vrcp.f32 %v1204_v19  ;;  %v1537_v28 = vmul.f32 -1.442695, %v1135_v20  ;;  %v1138_v29 = vadd.f32 %v1137_v25, %v695_v58  ;;  %v1048_v19 = vld [vmem:[%s2450_s26 + $0x60] sm:$0xff] }
 0x2af   : > { %v1825_v30 = vpop.eup %1824  ;;  %vm1247_vm8 = vcmp.lt.f32.partialorder %v1038_v8, %v1823_v26  ;;  %1844 = vrcp.f32 %v1202_v22  ;;  %v1540_v32 = vmul.f32 -1.442695, %v1146_v24  ;;  %v1050_v8 = vld [vmem:[%s2450_s26 + $0x70] sm:$0xff]  ;;  %v1049_v22 = vld [vmem:[%s2450_s26 + $0x68] sm:$0xff] }
 0x2b0   : > { %v1827_v33 = vpop.eup %1826  ;;  %v1543_v35 = vsel %vm1247_vm8, 1.0, %v2038_v34  ;;  %vm1245_vm9 = vcmp.lt.f32.partialorder %v1036_v21, %v1825_v30  ;;  %1846 = vpow2.f32 %v1539_v23  ;;  %v1538_v36 = vmul.f32 -1.442695, %v1138_v29 }
 0x2b1   : > { %v1829_v37 = vpop.eup %1828  ;;  %1295 = vst [vmem:[%s2458_s18 + $0x10] sm:$0xff] %v1543_v35  ;;  %v1541_v38 = vsel %vm1245_vm9, 1.0, %v2038_v34  ;;  %vm1248_vm10 = vcmp.lt.f32.partialorder %v1039_v27, %v1827_v33  ;;  %1848 = vpow2.f32 %v1537_v28 }
 0x2b2   : > { %v1831_v39 = vpop.eup %1830  ;;  %1293 = vst [vmem:[%s2458_s18] sm:$0xff] %v1541_v38  ;;  %v1544_v40 = vsel %vm1248_vm10, 1.0, %v2038_v34  ;;  %vm1246_vm11 = vcmp.lt.f32.partialorder %v1037_v31, %v1829_v37  ;;  %1850 = vpow2.f32 %v1540_v32 }
 0x2b3   : > { %v1833_v41 = vpop.eup %1832  ;;  %1296 = vst [vmem:[%s2458_s18 + $0x18] sm:$0xff] %v1544_v40  ;;  %v1542_v42 = vsel %vm1246_vm11, 1.0, %v2038_v34  ;;  %v1207_v43 = vadd.f32 1.0, %v1831_v39  ;;  %1852 = vpow2.f32 %v1538_v36 }
 0x2b4   : > { %v1835_v44 = vpop.eup %1834  ;;  %1294 = vst [vmem:[%s2458_s18 + $0x8] sm:$0xff] %v1542_v42  ;;  %v1205_v46 = vadd.f32 1.0, %v1833_v41 }
 0x2b5   : > { %v1837_v47 = vpop.eup %1836  ;;  %1854 = vrcp.f32 %v1207_v43  ;;  %v1208_v49 = vadd.f32 1.0, %v1835_v44 }
 0x2b6   : > { %v1839_v50 = vpop.eup %1838  ;;  %1856 = vrcp.f32 %v1205_v46  ;;  %v1206_v52 = vadd.f32 1.0, %v1837_v47 }
 0x2b7   : > { %v1841_v53 = vpop.eup %1840  ;;  %vm1251_vm12 = vcmp.lt.f32.partialorder %v1042_v45, %v1839_v50  ;;  %1858 = vrcp.f32 %v1208_v49 }
 0x2b8   : > { %v1843_v55 = vpop.eup %1842  ;;  %v1547_v56 = vsel %vm1251_vm12, 1.0, %v2038_v34  ;;  %vm1249_vm13 = vcmp.lt.f32.partialorder %v1040_v48, %v1841_v53  ;;  %1860 = vrcp.f32 %v1206_v52 }
 0x2b9   : > { %v1845_v57 = vpop.eup %1844  ;;  %1299 = vst [vmem:[%s2458_s18 + $0x30] sm:$0xff] %v1547_v56  ;;  %v1545_v58 = vsel %vm1249_vm13, 1.0, %v2038_v34  ;;  %vm1252_vm14 = vcmp.lt.f32.partialorder %v1043_v51, %v1843_v55 }
 0x2ba   : > { %v1847_v59 = vpop.eup %1846  ;;  %1297 = vst [vmem:[%s2458_s18 + $0x20] sm:$0xff] %v1545_v58  ;;  %v1548_v60 = vsel %vm1252_vm14, 1.0, %v2038_v34  ;;  %vm1250_vm15 = vcmp.lt.f32.partialorder %v1041_v54, %v1845_v57 }
 0x2bb   : > { %v1849_v61 = vpop.eup %1848  ;;  %1300 = vst [vmem:[%s2458_s18 + $0x38] sm:$0xff] %v1548_v60  ;;  %v1546_v62 = vsel %vm1250_vm15, 1.0, %v2038_v34  ;;  %v1211_v63 = vadd.f32 1.0, %v1847_v59 }
 0x2bc   : > { %v1851_v0 = vpop.eup %1850  ;;  %1298 = vst [vmem:[%s2458_s18 + $0x28] sm:$0xff] %v1546_v62  ;;  %v1209_v1 = vadd.f32 1.0, %v1849_v61 }
 0x2bd   : > { %v1853_v2 = vpop.eup %1852  ;;  %1862 = vrcp.f32 %v1211_v63  ;;  %v1212_v4 = vadd.f32 1.0, %v1851_v0 }
 0x2be   : > { %1864 = vrcp.f32 %v1209_v1  ;;  %v1210_v6 = vadd.f32 1.0, %v1853_v2 }
 0x2bf   : > { %v1855_v9 = vpop.eup %1854  ;;  %1866 = vrcp.f32 %v1212_v4 }
 0x2c0   : > { %v1857_v11 = vpop.eup %1856  ;;  %vm1255_vm0 = vcmp.lt.f32.partialorder %v1046_v3, %v1855_v9  ;;  %1868 = vrcp.f32 %v1210_v6 }
 0x2c1   : > { %v1859_v13 = vpop.eup %1858  ;;  %v1551_v14 = vsel %vm1255_vm0, 1.0, %v2038_v34  ;;  %vm1253_vm1 = vcmp.lt.f32.partialorder %v1044_v5, %v1857_v11 }
 0x2c2   : > { %v1861_v15 = vpop.eup %1860  ;;  %1303 = vst [vmem:[%s2458_s18 + $0x50] sm:$0xff] %v1551_v14  ;;  %v1549_v16 = vsel %vm1253_vm1, 1.0, %v2038_v34  ;;  %vm1256_vm2 = vcmp.lt.f32.partialorder %v1047_v10, %v1859_v13 }
 0x2c3   : > { %1301 = vst [vmem:[%s2458_s18 + $0x40] sm:$0xff] %v1549_v16  ;;  %v1552_v17 = vsel %vm1256_vm2, 1.0, %v2038_v34  ;;  %vm1254_vm3 = vcmp.lt.f32.partialorder %v1045_v12, %v1861_v15 }
 0x2c4   : > { %1304 = vst [vmem:[%s2458_s18 + $0x58] sm:$0xff] %v1552_v17  ;;  %v1550_v18 = vsel %vm1254_vm3, 1.0, %v2038_v34 }
 0x2c5   : > { %1302 = vst [vmem:[%s2458_s18 + $0x48] sm:$0xff] %v1550_v18 }
 0x2c7   : > { %v1863_v20 = vpop.eup %1862 }
 0x2c8   : > { %v1865_v21 = vpop.eup %1864  ;;  %vm1259_vm4 = vcmp.lt.f32.partialorder %v1050_v8, %v1863_v20 }
 0x2c9   : > { %v1867_v23 = vpop.eup %1866  ;;  %v1555_v24 = vsel %vm1259_vm4, 1.0, %v2038_v34  ;;  %vm1257_vm5 = vcmp.lt.f32.partialorder %v1048_v19, %v1865_v21 }
 0x2ca   : > { %v1869_v25 = vpop.eup %1868  ;;  %1307 = vst [vmem:[%s2458_s18 + $0x70] sm:$0xff] %v1555_v24  ;;  %v1553_v26 = vsel %vm1257_vm5, 1.0, %v2038_v34  ;;  %vm1260_vm6 = vcmp.lt.f32.partialorder %v1051_v7, %v1867_v23 }
 0x2cb   : > { %1305 = vst [vmem:[%s2458_s18 + $0x60] sm:$0xff] %v1553_v26  ;;  %v1556_v27 = vsel %vm1260_vm6, 1.0, %v2038_v34  ;;  %vm1258_vm7 = vcmp.lt.f32.partialorder %v1049_v22, %v1869_v25 }
 0x2cc   : > { %1308 = vst [vmem:[%s2458_s18 + $0x78] sm:$0xff] %v1556_v27  ;;  %v1554_v28 = vsel %vm1258_vm7, 1.0, %v2038_v34 }
 0x2cd   : > { %1306 = vst [vmem:[%s2458_s18 + $0x68] sm:$0xff] %v1554_v28 }
 0x2ce   : > { %1967 = shalt.err (!%p1964_p7)
}
 0x2cf   : > { %s1968_s14 = scalar_lea.hbm %s2501_s7, 2048  ;;  %s1972_s20 = scalar_lea.hbm %s2560_s6, 4096 }
 0x2d0   : > { %p1969_p8 = scmp.ne.s32.totalorder %s2501_s7, %s1968_s14  ;;  %p1973_p10 = scmp.lt.u32.totalorder %s2501_s7, %s2560_s6 }
 0x2d1   : > { %p1974_p11 = scmp.lt.u32.totalorder %s1972_s20, %s1968_s14  ;;  %p1976_p6 = scmp.lt.u32.totalorder %s1968_s14, %s2501_s7 }
 0x2d2   : > { %p1970_p3 = pnand %p1969_p8, %p2585_p4 }
 0x2d3   : > { %p1975_p1 = por %p1974_p11, %p1973_p10 }
 0x2d4   : > { %p1971_p9 = pneg %p1970_p3 }
 0x2d5   : > { %p1977_p12 = por %p1976_p6, %p1975_p1 }
 0x2d7   : > { %p1978_p13 = pnand %p1977_p12, %p1971_p9 }
 0x2d9   : > { %1981 = shalt.err (!%p1978_p13)
}
 0x2da   : > { %s2040_s0 = smov 128   ;;  %s2041_s28 = smov 256  }
 0x2db   : > { %s2042_s12 = smov 8  }
 0x2dc   : > { %1665 = dma.vmem_to_hbm [thread:$0]  (%p2585_p4), %s2505_s19, 2048, %s2501_s7, %s1310_s25, %s2040_s0, %s2041_s28, %s2042_s12  }
 0x2dd PF: > { %s1337_s13 = sand.u32 1, %s2012_s21   ;;  %p2586_p5 = scmp.ne.s32.totalorder %s2571_s10, 0 }
 0x2de   : > { %s1338_s11 = scalar_lea.sflag [#allocation4], %s1337_s13 }
 0x2df   : > { %p1672_p2 = pnand %p1448_p0, %p2586_p5 }
 0x2e1   : > { %2007 = dma.done.wait (!%p1672_p2), %s1338_s11, 2048  }
 0x2e2   : > { %2009 = vsyncadd (!%p1672_p2), %s1338_s11, 4294965248  ;;  %p20_p7 = scmp.ge.s32.totalorder %s2103_s27, 4   ;;  %s2587_s21 = smov %s2016_s22 }
 0x2e3   : > { %s2588_s22 = smov %s2020_s23  ;;  %s2589_s23 = smov %s2115_s30 }
 0x2e4   : > { %s2590_s24 = smov %s2103_s27  ;;  %22 = sbr.rel (!%p20_p7) target bundleno = 8 (0x8), region = 151 }
 0x2eb   :  { %1343 = vsyncpa [#allocation3], 1 }
 0x2ec   :  { %1345 = vsyncpa [#allocation3 + $0x1], 1 }
 0x2ed   :  { %1346 = vsyncpa [#allocation6], 1 }
 0x2ee   :  { %1348 = vsyncpa [#allocation6 + $0x1], 1 }
 0x2ef   :  { %1349 = vsyncpa [#allocation4], 1 }
 0x2f0   :  { %1351 = vsyncpa [#allocation4 + $0x1], 1 }

</bundles_post_ra>
